<compile_context>
chip_gen: v5e
topology: v5e:2x2
jax: 0.10.0
libtpu: 0.0.40
codegen_flags: <defaults>
</compile_context>

<pallas_src>
import functools
import math

import jax
import jax.numpy as jnp
from jax.experimental import pallas as pl
from jax.experimental.pallas import tpu as pltpu


def _layer_norm_kernel(x_ref, g_ref, b_ref, o_ref, *, n_features: int, eps: float):
    """One grid step over a (tile_rows, F_padded) slab.

    Padded feature lanes (if any) hold zeros, so a single-pass sum / sum-of-squares
    over the full (padded) lane axis is exact as long as we divide by the real
    feature count.  gamma/beta are zero in padded lanes -> padded outputs are zero.
    """
    x = x_ref[...].astype(jnp.float32)                      # (tile_rows, Fp)
    s = jnp.sum(x, axis=-1, keepdims=True)                  # (tile_rows, 1)
    ss = jnp.sum(x * x, axis=-1, keepdims=True)             # (tile_rows, 1)
    mean = s * (1.0 / float(n_features))
    # Unbiased variance (torch.std default): (sum(x^2) - n*mean^2) / (n - 1)
    var = (ss - s * mean) * (1.0 / float(max(n_features - 1, 1)))
    var = jnp.maximum(var, 0.0)                             # guard tiny negative fp error
    denom = jnp.sqrt(var) + eps                             # (tile_rows, 1)
    # EUP approx reciprocal on the per-row column + one Newton step for f32 accuracy.
    r = pl.reciprocal(denom, approx=True)
    inv = r * (2.0 - denom * r)
    gamma = g_ref[...]                                      # (1, Fp), already float32
    beta = b_ref[...]                                       # (1, Fp), already float32
    # Single lane-dense full-tile store.
    o_ref[...] = (gamma * ((x - mean) * inv) + beta).astype(o_ref.dtype)


def _round_up(x: int, m: int) -> int:
    return ((x + m - 1) // m) * m


def _cdiv(a: int, b: int) -> int:
    return -(-a // b)


def _tpu_info() -> tuple[int, int]:
    """(vmem_capacity_bytes, num_tensorcores) with generation-aware fallbacks."""
    kind = ""
    try:
        kind = jax.devices()[0].device_kind.lower()
    except Exception:
        pass
    is_v7 = ("v7" in kind) or ("7x" in kind)

    vmem = 0
    cores = 0
    try:
        info = pltpu.get_tpu_info()
        vmem = int(getattr(info, "vmem_capacity_bytes", 0) or 0)
        for attr in ("num_tensorcores", "tensorcores_per_chip", "num_cores", "core_count"):
            val = getattr(info, attr, None)
            if val:
                cores = int(val)
                break
    except Exception:
        pass

    if vmem <= 0:
        vmem = (64 << 20) if is_v7 else (128 << 20)   # only v7x-like parts are 64 MiB
    if cores <= 0:
        cores = 2 if is_v7 else 1                     # v5e/v6e: single TensorCore
    return vmem, cores


def _choose_tile_rows(rows: int, fp: int, in_itemsize: int, out_itemsize: int,
                      tile_budget_bytes: int, sublane: int) -> int:
    # Per-row VMEM cost: double-buffered input + output tiles, plus ~3 live
    # full-tile f32 temporaries.  (The double-buffer factor lives HERE only;
    # the budget is not halved again by the caller.)
    per_row = fp * (2 * (in_itemsize + out_itemsize) + 3 * 4)
    cap = max(tile_budget_bytes // max(per_row, 1), sublane)
    cap = max((cap // sublane) * sublane, sublane)
    # Never exceed what the (row-padded) input actually needs.
    return min(cap, _round_up(rows, sublane))


def layer_norm(x, gamma, beta, *, eps: float = 1e-6, tile_rows: int | None = None):
    """x: (..., features). gamma/beta: (features,). Returns same shape/dtype as x."""
    orig_shape = x.shape
    features = orig_shape[-1]
    rows = int(math.prod(orig_shape[:-1])) if len(orig_shape) > 1 else 1

    x2 = x.reshape(rows, features)
    # Cast params to f32 once in the wrapper (kernel consumes them directly).
    g2 = gamma.reshape(1, features).astype(jnp.float32)
    b2 = beta.reshape(1, features).astype(jnp.float32)

    # Pad feature axis to a multiple of 128 -> unmasked, lane-dense loads/stores.
    fp = max(_round_up(features, 128), 128)
    if fp != features:
        x2 = jnp.pad(x2, ((0, 0), (0, fp - features)))
        g2 = jnp.pad(g2, ((0, 0), (0, fp - features)))
        b2 = jnp.pad(b2, ((0, 0), (0, fp - features)))

    in_itemsize = jnp.dtype(x.dtype).itemsize
    out_itemsize = in_itemsize
    sublane = 16 if min(in_itemsize, out_itemsize) < 4 else 8

    vmem_cap, num_cores = _tpu_info()
    # Headroom: ~48 MiB limit on 64 MiB parts (v7x), ~96 MiB on 128 MiB parts (v5e/v6e).
    vmem_limit = max(min((vmem_cap * 3) // 4, vmem_cap - (16 << 20)), 32 << 20)
    tile_budget = vmem_limit - (2 << 20)   # gamma/beta blocks + misc scratch headroom

    if tile_rows is None:
        tile_rows = _choose_tile_rows(rows, fp, in_itemsize, out_itemsize,
                                      tile_budget, sublane)
    else:
        tile_rows = max(_round_up(int(tile_rows), sublane), sublane)

    # Multi-TensorCore chips (v7x): split so each core gets equal grid steps.
    # Single-TC chips (v5e/v6e): keep one big tile per step, no forced split.
    if num_cores > 1 and rows > sublane:
        tile_rows = min(tile_rows, _round_up(_cdiv(rows, num_cores), sublane))

    grid = _cdiv(rows, tile_rows)
    if num_cores > 1:
        grid = _round_up(grid, num_cores)

    rows_padded = grid * tile_rows
    if rows_padded != rows:
        # Pad rows with zeros: std=0 -> denom=eps -> output = beta; finite, sliced off.
        x2 = jnp.pad(x2, ((0, rows_padded - rows), (0, 0)))

    kernel = functools.partial(_layer_norm_kernel, n_features=features, eps=float(eps))

    def _build(dim_sem):
        return pl.pallas_call(
            kernel,
            out_shape=jax.ShapeDtypeStruct((rows_padded, fp), x.dtype),
            grid_spec=pltpu.PrefetchScalarGridSpec(
                num_scalar_prefetch=0,
                grid=(grid,),
                in_specs=[
                    pl.BlockSpec((tile_rows, fp), lambda i: (i, 0)),
                    pl.BlockSpec((1, fp), lambda i: (0, 0)),
                    pl.BlockSpec((1, fp), lambda i: (0, 0)),
                ],
                out_specs=pl.BlockSpec((tile_rows, fp), lambda i: (i, 0)),
            ),
            compiler_params=pltpu.CompilerParams(
                dimension_semantics=dim_sem,
                vmem_limit_bytes=int(vmem_limit),
            ),
        )

    if num_cores > 1:
        core_parallel = getattr(pltpu, "CORE_PARALLEL", "parallel")
        try:
            out2 = _build((core_parallel,))(x2, g2, b2)
        except Exception:
            # Fallback if cross-core semantics are unavailable on this part.
            out2 = _build(("parallel",))(x2, g2, b2)
    else:
        out2 = _build(("parallel",))(x2, g2, b2)

    if rows_padded != rows or fp != features:
        out2 = out2[:rows, :features]
    return out2.reshape(orig_shape)


def _reference(x, gamma, beta, eps=1e-6):
    x32 = x.astype(jnp.float32)
    mean = jnp.mean(x32, axis=-1, keepdims=True)
    # Unbiased std, matching torch.std default.
    var = jnp.sum((x32 - mean) ** 2, axis=-1, keepdims=True) / max(x.shape[-1] - 1, 1)
    std = jnp.sqrt(var)
    return (gamma * (x32 - mean) / (std + eps) + beta).astype(x.dtype)


if __name__ == "__main__":
    key = jax.random.PRNGKey(0)
    batch, seq, hidden = 2, 8, 32          # features = hidden = 32

    x = jax.random.normal(key, (batch, seq, hidden), dtype=jnp.float32)
    # Deterministic parameter init, same as nn.Parameter(torch.ones/zeros(features)).
    gamma = jnp.ones((hidden,), dtype=jnp.float32)
    beta = jnp.zeros((hidden,), dtype=jnp.float32)

    out = layer_norm(x, gamma, beta, eps=1e-6)
    out = jax.block_until_ready(out)

    ref = _reference(x, gamma, beta, eps=1e-6)
    assert out.shape == x.shape and out.dtype == x.dtype
    assert jnp.allclose(out, ref, atol=1e-4, rtol=1e-4), "mismatch vs reference"

    print("KERNEL_OK")
</pallas_src>

<mosaic_0001>
module attributes {stable_mosaic.version = 11 : i64} {
  func.func @_layer_norm_kernel(%arg0: i32, %arg1: memref<16x128xf32, #tpu.memory_space<vmem>>, %arg2: memref<1x128xf32, #tpu.memory_space<vmem>>, %arg3: memref<1x128xf32, #tpu.memory_space<vmem>>, %arg4: memref<16x128xf32, #tpu.memory_space<vmem>>) attributes {dimension_semantics = [#tpu.dimension_semantics<parallel>], iteration_bounds = array<i64: 1>, scalar_prefetch = 0 : i64, scratch_operands = 0 : i64, tpu.core_type = #tpu.core_type<tc>, window_params = [{transform_indices = @transform_0, window_bounds = array<i64: 16, 128>}, {pipeline_mode = #tpu.pipeline_mode<synchronous>, transform_indices = @transform_1, window_bounds = array<i64: 1, 128>}, {pipeline_mode = #tpu.pipeline_mode<synchronous>, transform_indices = @transform_2, window_bounds = array<i64: 1, 128>}, {transform_indices = @transform_3, window_bounds = array<i64: 16, 128>}]} {
    %c0 = arith.constant 0 : index
    %c0_0 = arith.constant 0 : index
    %0 = vector.load %arg1[%c0, %c0_0] : memref<16x128xf32, #tpu.memory_space<vmem>>, vector<16x128xf32>
    %cst = arith.constant dense<0.000000e+00> : vector<16xf32>
    %1 = vector.multi_reduction <add>, %0, %cst [1] : vector<16x128xf32> to vector<16xf32>
    %2 = vector.shape_cast %1 : vector<16xf32> to vector<16x1xf32>
    %3 = arith.mulf %0, %0 : vector<16x128xf32>
    %cst_1 = arith.constant dense<0.000000e+00> : vector<16xf32>
    %4 = vector.multi_reduction <add>, %3, %cst_1 [1] : vector<16x128xf32> to vector<16xf32>
    %5 = vector.shape_cast %4 : vector<16xf32> to vector<16x1xf32>
    %cst_2 = arith.constant 3.125000e-02 : f32
    %6 = vector.broadcast %cst_2 : f32 to vector<16x1xf32>
    %7 = arith.mulf %2, %6 : vector<16x1xf32>
    %8 = arith.mulf %2, %7 : vector<16x1xf32>
    %9 = arith.subf %5, %8 : vector<16x1xf32>
    %cst_3 = arith.constant 0.0322580636 : f32
    %10 = vector.broadcast %cst_3 : f32 to vector<16x1xf32>
    %11 = arith.mulf %9, %10 : vector<16x1xf32>
    %cst_4 = arith.constant 0.000000e+00 : f32
    %12 = vector.broadcast %cst_4 : f32 to vector<16x1xf32>
    %13 = arith.maximumf %11, %12 : vector<16x1xf32>
    %14 = math.sqrt %13 : vector<16x1xf32>
    %cst_5 = arith.constant 9.99999997E-7 : f32
    %15 = vector.broadcast %cst_5 : f32 to vector<16x1xf32>
    %16 = arith.addf %14, %15 : vector<16x1xf32>
    %17 = tpu.reciprocal %16 {approx = true} : vector<16x1xf32> -> vector<16x1xf32>
    %18 = arith.mulf %16, %17 : vector<16x1xf32>
    %cst_6 = arith.constant 2.000000e+00 : f32
    %19 = vector.broadcast %cst_6 : f32 to vector<16x1xf32>
    %20 = arith.subf %19, %18 : vector<16x1xf32>
    %21 = arith.mulf %17, %20 : vector<16x1xf32>
    %c0_7 = arith.constant 0 : index
    %c0_8 = arith.constant 0 : index
    %22 = vector.load %arg2[%c0_7, %c0_8] : memref<1x128xf32, #tpu.memory_space<vmem>>, vector<1x128xf32>
    %c0_9 = arith.constant 0 : index
    %c0_10 = arith.constant 0 : index
    %23 = vector.load %arg3[%c0_9, %c0_10] : memref<1x128xf32, #tpu.memory_space<vmem>>, vector<1x128xf32>
    %24 = vector.broadcast %7 : vector<16x1xf32> to vector<16x128xf32>
    %25 = arith.subf %0, %24 : vector<16x128xf32>
    %26 = vector.broadcast %21 : vector<16x1xf32> to vector<16x128xf32>
    %27 = arith.mulf %25, %26 : vector<16x128xf32>
    %28 = vector.broadcast %22 : vector<1x128xf32> to vector<16x128xf32>
    %29 = arith.mulf %28, %27 : vector<16x128xf32>
    %30 = vector.broadcast %23 : vector<1x128xf32> to vector<16x128xf32>
    %31 = arith.addf %29, %30 : vector<16x128xf32>
    %c0_11 = arith.constant 0 : index
    %c0_12 = arith.constant 0 : index
    %32 = vector.load %arg4[%c0_11, %c0_12] : memref<16x128xf32, #tpu.memory_space<vmem>>, vector<16x128xf32>
    tpu.vector_store %arg4[%c0_11, %c0_12], %31 {strides = array<i32>} : memref<16x128xf32, #tpu.memory_space<vmem>>, vector<16x128xf32>,
    return
  }
  func.func @transform_0(%arg0: i32) -> (i32, i32) {
    %c0_i32 = arith.constant 0 : i32
    %c0_i32_0 = arith.constant 0 : i32
    return %arg0, %c0_i32 : i32, i32
  }
  func.func @transform_1(%arg0: i32) -> (i32, i32) {
    %c0_i32 = arith.constant 0 : i32
    %c0_i32_0 = arith.constant 0 : i32
    %c0_i32_1 = arith.constant 0 : i32
    return %c0_i32, %c0_i32_0 : i32, i32
  }
  func.func @transform_2(%arg0: i32) -> (i32, i32) {
    %c0_i32 = arith.constant 0 : i32
    %c0_i32_0 = arith.constant 0 : i32
    %c0_i32_1 = arith.constant 0 : i32
    return %c0_i32, %c0_i32_0 : i32, i32
  }
  func.func @transform_3(%arg0: i32) -> (i32, i32) {
    %c0_i32 = arith.constant 0 : i32
    %c0_i32_0 = arith.constant 0 : i32
    return %arg0, %c0_i32 : i32, i32
  }
}

</mosaic_0001>

<bundles_post_ra>
// kernel: tpu_custom_call.1
= control target key start
LH: loop header
LB: loop body
LE: loop exit
PB: predicated region body
PF: predicated region fallthrough
CT: control target
= control target key end

     0   :  { %8 = vsyncpa [#allocation3], 0  ;;  %s281_s0 = inlined_call_operand.hbm [shape: f32[16,128], index: 0, kind: input, shape index: {}]   ;;  %s282_s1 = inlined_call_operand.hbm [shape: f32[1,128], index: 1, kind: input, shape index: {}]   ;;  %s283_s2 = inlined_call_operand.vmem [shape: f32[1,128], index: 2, kind: input, shape index: {}]   ;;  %s284_s3 = inlined_call_operand.hbm [shape: f32[16,128], index: 3, kind: output, shape index: {}]  }
   0x1   :  { %9 = vsyncpa [#allocation6], 0 }
   0x2   :  { %10 = vsyncpa [#allocation4], 0  ;;  %s15_s14 = sshll.u32 %s281_s0, 4  ;;  %s232_s15 = smov [#allocation2]   ;;  %s16_s14 = int_to_ptr.hbm [resolvable:$true] %s15_s14 }
   0x3   :  { %s17_s16 = sshll.u32 %s232_s15, 4  ;;  %s29_s19 = sshll.u32 %s282_s1, 4  ;;  %s18_s16 = int_to_ptr.vmem [resolvable:$true] %s17_s16  ;;  %s30_s19 = int_to_ptr.hbm [resolvable:$true] %s29_s19 }
   0x4   :  { %s233_s20 = smov 128   ;;  %s234_s21 = smov 8  }
   0x5   :  { %23 = dma.hbm_to_vmem [thread:$0]  %s16_s14, 256, %s18_s16, [#allocation3], %s233_s20, %s233_s20, %s234_s21  }
   0x6   :  { %s235_s22 = smov [#allocation5]  }
   0x7   :  { %s31_s23 = sshll.u32 %s235_s22, 4  ;;  %s32_s23 = int_to_ptr.vmem [resolvable:$true] %s31_s23 }
   0x8   :  { %34 = dma.hbm_to_vmem [thread:$0]  %s30_s19, 16, %s32_s23, [#allocation6]  }
   0x9   :  { %226 = dma.done.wait [#allocation3], 256  }
   0xa   :  { %227 = vsyncadd [#allocation3], 4294967040 }
   0xb   :  { %228 = dma.done.wait [#allocation6], 16  }
   0xc   :  { %229 = vsyncadd [#allocation6], 4294967280  ;;  %v45_v0 = vld [vmem:[#allocation2] sm:$0xff]  ;;  %v266_v2 = vld [vmem:[#allocation2 + $0x8] sm:$0xff]  ;;  %s236_s24 = smov [#allocation7]   ;;  %s125_s28 = sshll.u32 %s284_s3, 4  ;;  %s126_s28 = int_to_ptr.hbm [resolvable:$true] %s125_s28 }
   0xd   :  { %47 = vadd.xlane.f32.xlu0 %v45_v0  ;;  %v51_v1 = vmul.f32 %v45_v0, %v45_v0  ;;  %v52_v3 = vmul.f32 %v266_v2, %v266_v2  ;;  %v144_v45 = vld [vmem:[#allocation5] ss:$0 sm:$0xff]  ;;  %v145_v47 = vld [vmem:[%s283_s2] ss:$0 sm:$0xff]  ;;  %s123_s25 = sshll.u32 %s236_s24, 4  ;;  %s124_s25 = int_to_ptr.vmem [resolvable:$true] %s123_s25 }
   0xf   :  { %53 = vadd.xlane.f32.xlu1 %v51_v1 }
  0x15   :  { %49 = vadd.xlane.f32.xlu0 %v266_v2 }
  0x17   :  { %55 = vadd.xlane.f32.xlu1 %v52_v3 }
  0x80   :  { %v48_v4 = vpop.xlane.xlu0 %47 }
  0x81   :  { %v57_v5 = vmul.f32 0.03125, %v48_v4 }
  0x82   :  { %v54_v6 = vpop.xlane.xlu1 %53 }
  0x83   :  { %v59_v7 = vmul.f32 %v57_v5, %v48_v4  ;;  %v103_v43 = vsub.f32 %v45_v0, %v57_v5 }
  0x85   :  { %v61_v8 = vsub.f32 %v54_v6, %v59_v7 }
  0x87   :  { %v63_v9 = vmul.f32 0.032258064, %v61_v8 }
  0x88   :  { %v50_v10 = vpop.xlane.xlu0 %49 }
  0x89   :  { %v65_v11 = vmax.f32 %v63_v9, 0.0  ;;  %v58_v12 = vmul.f32 0.03125, %v50_v10 }
  0x8a   :  { %v56_v13 = vpop.xlane.xlu1 %55 }
  0x8b   :  { %146 = vrsqrt.f32 %v65_v11  ;;  %v60_v14 = vmul.f32 %v58_v12, %v50_v10  ;;  %vm74_vm0 = vcmp.eq.f32.partialorder %v65_v11, inf  ;;  %v77_v28 = vand.u32 2147483648, %v65_v11 }
  0x8c   :  { %vm76_vm1 = vcmp.eq.f32.partialorder %v65_v11, 0.0  ;;  %v104_v53 = vsub.f32 %v266_v2, %v58_v12 }
  0x8d   :  { %v62_v15 = vsub.f32 %v56_v13, %v60_v14 }
  0x8f   :  { %v64_v16 = vmul.f32 0.032258064, %v62_v15 }
  0x91   :  { %v147_v17 = vpop.eup %146  ;;  %v66_v18 = vmax.f32 %v64_v16, 0.0 }
  0x92   :  { %v68_v19 = vmul.f32 %v147_v17, %v65_v11 }
  0x93   :  { %148 = vrsqrt.f32 %v66_v18  ;;  %vm86_vm2 = vcmp.eq.f32.partialorder %v66_v18, inf  ;;  %v89_v36 = vand.u32 2147483648, %v66_v18  ;;  %vm88_vm3 = vcmp.eq.f32.partialorder %v66_v18, 0.0 }
  0x94   :  { %v69_v20 = vmul.f32 %v147_v17, %v68_v19 }
  0x96   :  { %v70_v21 = vmul.f32 0.5, %v69_v20 }
  0x98   :  { %v71_v22 = vsub.f32 1.5, %v70_v21 }
  0x99   :  { %v149_v23 = vpop.eup %148 }
  0x9a   :  { %v80_v24 = vmul.f32 %v149_v23, %v66_v18  ;;  %v72_v25 = vmul.f32 %v147_v17, %v71_v22 }
  0x9c   :  { %v81_v26 = vmul.f32 %v149_v23, %v80_v24  ;;  %v73_v27 = vmul.f32 %v72_v25, %v65_v11 }
  0x9e   :  { %v82_v29 = vmul.f32 0.5, %v81_v26  ;;  %v75_v30 = vsel %vm74_vm0, %v65_v11, %v73_v27 }
  0x9f   :  { %v78_v31 = vsel %vm76_vm1, %v77_v28, %v75_v30 }
  0xa0   :  { %v83_v32 = vsub.f32 1.5, %v82_v29  ;;  %v91_v33 = vadd.f32 1e-06, %v78_v31 }
  0xa2   :  { %v84_v34 = vmul.f32 %v149_v23, %v83_v32  ;;  %150 = vrcp.f32 %v91_v33 }
  0xa4   :  { %v85_v35 = vmul.f32 %v84_v34, %v66_v18 }
  0xa6   :  { %v87_v37 = vsel %vm86_vm2, %v66_v18, %v85_v35 }
  0xa7   :  { %v90_v38 = vsel %vm88_vm3, %v89_v36, %v87_v37 }
  0xa8   :  { %v151_v39 = vpop.eup %150  ;;  %v92_v40 = vadd.f32 1e-06, %v90_v38 }
  0xa9   :  { %v95_v41 = vmul.f32 %v151_v39, %v91_v33 }
  0xaa   :  { %152 = vrcp.f32 %v92_v40 }
  0xab   :  { %v97_v42 = vsub.f32 2.0, %v95_v41 }
  0xad   :  { %v99_v44 = vmul.f32 %v151_v39, %v97_v42 }
  0xaf   :  { %v105_v46 = vmul.f32 %v103_v43, %v99_v44 }
  0xb0   :  { %v153_v48 = vpop.eup %152 }
  0xb1   :  { %v96_v49 = vmul.f32 %v153_v48, %v92_v40  ;;  %v110_v50 = vmul.f32 %v144_v45, %v105_v46 }
  0xb3   :  { %v98_v51 = vsub.f32 2.0, %v96_v49  ;;  %v115_v52 = vadd.f32 %v145_v47, %v110_v50 }
  0xb5   :  { %v100_v54 = vmul.f32 %v153_v48, %v98_v51  ;;  %117 = vst [vmem:[#allocation7] sm:$0xff] %v115_v52 }
  0xb7   :  { %v106_v55 = vmul.f32 %v104_v53, %v100_v54 }
  0xb9   :  { %v111_v56 = vmul.f32 %v144_v45, %v106_v55 }
  0xbb   :  { %v116_v57 = vadd.f32 %v145_v47, %v111_v56 }
  0xbd   :  { %118 = vst [vmem:[#allocation7 + $0x8] sm:$0xff] %v116_v57 }
  0xbe   :  { %131 = dma.vmem_to_hbm [thread:$0]  %s124_s25, 256, %s126_s28, [#allocation4], %s233_s20, %s233_s20, %s234_s21  }
  0xbf   :  { %230 = dma.done.wait [#allocation4], 256  }
  0xc0   :  { %231 = vsyncadd [#allocation4], 4294967040 }
  0xc1   :  { %136 = vsyncpa [#allocation3], 1 }
  0xc2   :  { %137 = vsyncpa [#allocation6], 1 }
  0xc3   :  { %138 = vsyncpa [#allocation4], 1 }

</bundles_post_ra>
